<compile_context>
chip_gen: v5e
topology: v5e:2x2
jax: 0.10.0
libtpu: 0.0.40
codegen_flags: <defaults>
</compile_context>

<pallas_src>
import math

import jax
import jax.numpy as jnp
import numpy as np
from jax.experimental import pallas as pl
from jax.experimental.pallas import tpu as pltpu

_PI_TORCH = 3.1415926          # constant used verbatim by the PyTorch module
_TWO_PI = 2.0 * math.pi
_INV_TWO_PI = 1.0 / _TWO_PI

# Anchor constants from AnchorBondingBoxFeature (compile-time scalars).
_ANC_W = 2.0                   # width
_ANC_L = 4.0                   # length
_ANC_H = 1.5                   # height
_ANC_Z = -4.5                  # z
_DIAG = float(np.sqrt(np.float32(_ANC_L) ** 2 + np.float32(_ANC_W) ** 2))  # sqrt(20)


def _round_up(v, m):
    return (v + m - 1) // m * m


# ----------------------------------------------------------------------------
# Glue: only the spatially varying anchor channels (anc_x, anc_y) -> (2, H*W).
# Values identical to the PyTorch linspace @ ones construction.  (Under jit
# this is constant-folded; it is tiny either way: 2*HW*4 bytes.)
# ----------------------------------------------------------------------------
def make_anchor_xy(f_height, f_width, dtype=jnp.float32):
    anc_x = jnp.broadcast_to(
        jnp.linspace(0.0, 70.0, f_height, dtype=dtype)[:, None],
        (f_height, f_width))
    anc_y = jnp.broadcast_to(
        jnp.linspace(-35.0, 35.0, f_width, dtype=dtype)[None, :],
        (f_height, f_width))
    return jnp.stack([anc_x, anc_y], axis=0).reshape(2, f_height * f_width)


# ----------------------------------------------------------------------------
# Pallas kernel: per-channel bbox decode over (S, 128) lane-dense tiles.
# ----------------------------------------------------------------------------
def _wrap_angle(t):
    # atan2(sin(t), cos(t)) == "wrap t into (-pi, pi]".  Floor-based wrap so
    # only VPU (+1 EUP-free floor) ops are needed; divide strength-reduced to
    # a multiply by a precomputed constant.
    # TODO(synk): differs from torch.atan2(sin, cos) only by float rounding at
    # the +/-pi boundary and ~1ulp trig error.
    return t - _TWO_PI * jnp.floor(t * _INV_TWO_PI + 0.5)


def _decode_kernel(x_ref, anc_ref, o_ref):
    # x_ref / o_ref: (14, S, 128) one batch item; anc_ref: (2, S, 128).
    ax = anc_ref[0]                              # (S, 128) anc_x tile
    ay = anc_ref[1]                              # (S, 128) anc_y tile
    for s in range(2):                           # two anchor sets (ori 0 / 90deg)
        base = 7 * s
        ori = 0.0 if s == 0 else _PI_TORCH * 0.5
        # xy: x * sqrt(l^2 + w^2) + anchor_xy
        o_ref[base + 0] = x_ref[base + 0] * _DIAG + ax
        o_ref[base + 1] = x_ref[base + 1] * _DIAG + ay
        # z: x * h + z
        o_ref[base + 2] = x_ref[base + 2] * _ANC_H + _ANC_Z
        # l, w, h: exp(x) * const
        o_ref[base + 3] = jnp.exp(x_ref[base + 3]) * _ANC_L
        o_ref[base + 4] = jnp.exp(x_ref[base + 4]) * _ANC_W
        o_ref[base + 5] = jnp.exp(x_ref[base + 5]) * _ANC_H
        # ori: wrap(x + anchor_ori)
        o_ref[base + 6] = _wrap_angle(x_ref[base + 6] + ori)


def offset_to_bbox(x, *, max_row_tile=512):
    """x: [B, 14, H, W] float32 -> pred bbox feature [B, 14, H, W]."""
    B, C, H, W = x.shape
    if C != 14:
        raise ValueError("OffsettoBbox expects num_anc * 7 = 14 regression channels")
    HW = H * W
    HW_pad = _round_up(HW, 128)          # lane-dense layout prerequisite
    n_rows = HW_pad // 128

    # Spatial tile in units of 128-lane rows (multiple of 8, or the full dim).
    if n_rows <= max_row_tile:
        S = n_rows
        if B == 1 and n_rows >= 16:
            # keep >= 2 grid steps so both v7x TensorCores get parallel work
            S = _round_up((n_rows + 1) // 2, 8)
    else:
        S = max_row_tile
    n_tiles = pl.cdiv(n_rows, S)

    x2 = x.reshape(B, C, HW)
    if HW_pad != HW:
        # TODO(synk): this pad is a wrapper-side XLA copy; it fuses with the
        # producer of x in a real pipeline.
        x2 = jnp.pad(x2, ((0, 0), (0, 0), (0, HW_pad - HW)))
    x4 = x2.reshape(B, C, n_rows, 128)

    anc = make_anchor_xy(H, W, dtype=x.dtype)            # (2, HW)
    if HW_pad != HW:
        anc = jnp.pad(anc, ((0, 0), (0, HW_pad - HW)))
    anc3 = anc.reshape(2, n_rows, 128)

    out = pl.pallas_call(
        _decode_kernel,
        out_shape=jax.ShapeDtypeStruct((B, C, n_rows, 128), x.dtype),
        # batch innermost: anc block index depends only on the spatial tile,
        # so its DMA is skipped on consecutive batch steps.
        grid=(n_tiles, B),
        in_specs=[
            pl.BlockSpec((None, C, S, 128), lambda t, b: (b, 0, t, 0)),  # x tile
            pl.BlockSpec((2, S, 128), lambda t, b: (0, t, 0)),           # anc_xy tile
        ],
        out_specs=pl.BlockSpec((None, C, S, 128), lambda t, b: (b, 0, t, 0)),
        compiler_params=pltpu.CompilerParams(
            dimension_semantics=("parallel", "parallel")),
    )(x4, anc3)

    out = out.reshape(B, C, HW_pad)
    if HW_pad != HW:
        out = out[:, :, :HW]
    return out.reshape(B, C, H, W)


# ----------------------------------------------------------------------------
# Pure-JAX reference (mirrors the PyTorch forward literally).
# ----------------------------------------------------------------------------
def _make_anchor_set_full(f_height, f_width, dtype=jnp.float32):
    anc_x = jnp.broadcast_to(
        jnp.linspace(0.0, 70.0, f_height, dtype=dtype)[:, None],
        (f_height, f_width))[None]
    anc_y = jnp.broadcast_to(
        jnp.linspace(-35.0, 35.0, f_width, dtype=dtype)[None, :],
        (f_height, f_width))[None]
    ones = jnp.ones((1, f_height, f_width), dtype=dtype)
    anc_z = ones * -4.5
    anc_w = ones * _ANC_W
    anc_l = ones * _ANC_L
    anc_h = ones * _ANC_H
    anc_ori = ones * 0.0
    anc_ori_90 = ones * _PI_TORCH / 2.0
    set1 = jnp.concatenate((anc_x, anc_y, anc_z, anc_l, anc_w, anc_h, anc_ori), axis=0)
    set2 = jnp.concatenate((anc_x, anc_y, anc_z, anc_l, anc_w, anc_h, anc_ori_90), axis=0)
    return jnp.concatenate((set1, set2), axis=0)          # [14, H, W]


def offset_to_bbox_ref(x):
    anc = _make_anchor_set_full(x.shape[2], x.shape[3], dtype=x.dtype)[None]  # [1,14,H,W]
    pred_xy_1 = x[:, :2] * jnp.sqrt(anc[:, 3:4] ** 2 + anc[:, 4:5] ** 2) + anc[:, :2]
    pred_z_1 = x[:, 2:3] * anc[:, 5:6] + anc[:, 2:3]
    pred_whl_1 = jnp.exp(x[:, 3:6]) * anc[:, 3:6]
    pred_ori_1 = jnp.arctan2(jnp.sin(x[:, 6:7] + anc[:, 6:7]),
                             jnp.cos(x[:, 6:7] + anc[:, 6:7]))
    pred_xy_2 = x[:, 7:9] * jnp.sqrt(anc[:, 10:11] ** 2 + anc[:, 11:12] ** 2) + anc[:, 7:9]
    pred_z_2 = x[:, 9:10] * anc[:, 12:13] + anc[:, 9:10]
    pred_whl_2 = jnp.exp(x[:, 10:13]) * anc[:, 10:13]
    pred_ori_2 = jnp.arctan2(jnp.sin(x[:, 13:14] + anc[:, 13:14]),
                             jnp.cos(x[:, 13:14] + anc[:, 13:14]))
    return jnp.concatenate((pred_xy_1, pred_z_1, pred_whl_1, pred_ori_1,
                            pred_xy_2, pred_z_2, pred_whl_2, pred_ori_2), axis=1)


if __name__ == "__main__":
    key = jax.random.PRNGKey(0)
    decode = jax.jit(offset_to_bbox)   # jit so the anchor construction is constant-folded

    # 1) Small demo: batch=2, 14 regression channels, 16x16 feature map
    #    (HW=256 -> 2 lane-rows, single spatial tile, grid=(1, 2)).
    B, C, H, W = 2, 14, 16, 16
    k1, k2, k3 = jax.random.split(key, 3)
    x1 = jax.random.normal(k1, (B, C, H, W), dtype=jnp.float32) * 0.5
    out1 = jax.block_until_ready(decode(x1))
    assert out1.shape == (B, C, H, W)
    np.testing.assert_allclose(np.asarray(out1),
                               np.asarray(offset_to_bbox_ref(x1)),
                               rtol=1e-5, atol=1e-5)

    # 2) B=1 path: spatial axis split into >=2 tiles (48x48 -> 18 rows -> S=16,
    #    grid=(2,1) with a partial last block).
    x2 = jax.random.normal(k2, (1, C, 48, 48), dtype=jnp.float32) * 0.5
    out2 = jax.block_until_ready(decode(x2))
    np.testing.assert_allclose(np.asarray(out2),
                               np.asarray(offset_to_bbox_ref(x2)),
                               rtol=1e-5, atol=1e-5)

    # 3) HW not a multiple of 128 (18x18=324 -> padded to 384, pad sliced off).
    x3 = jax.random.normal(k3, (2, C, 18, 18), dtype=jnp.float32) * 0.5
    out3 = jax.block_until_ready(decode(x3))
    np.testing.assert_allclose(np.asarray(out3),
                               np.asarray(offset_to_bbox_ref(x3)),
                               rtol=1e-5, atol=1e-5)

    print("KERNEL_OK")
</pallas_src>

<mosaic_0001>
module attributes {stable_mosaic.version = 11 : i64} {
  func.func @_decode_kernel(%arg0: i32, %arg1: i32, %arg2: memref<1x14x2x128xf32, #tpu.memory_space<vmem>>, %arg3: memref<2x2x128xf32, #tpu.memory_space<vmem>>, %arg4: memref<1x14x2x128xf32, #tpu.memory_space<vmem>>) attributes {dimension_semantics = [#tpu.dimension_semantics<parallel>, #tpu.dimension_semantics<parallel>], iteration_bounds = array<i64: 1, 2>, scalar_prefetch = 0 : i64, scratch_operands = 0 : i64, tpu.core_type = #tpu.core_type<tc>, window_params = [{transform_indices = @transform_0, window_bounds = array<i64: 1, 14, 2, 128>}, {transform_indices = @transform_1, window_bounds = array<i64: 2, 2, 128>}, {transform_indices = @transform_2, window_bounds = array<i64: 1, 14, 2, 128>}]} {
    %c0 = arith.constant 0 : index
    %c0_0 = arith.constant 0 : index
    %c0_1 = arith.constant 0 : index
    %0 = vector.load %arg3[%c0, %c0_0, %c0_1] : memref<2x2x128xf32, #tpu.memory_space<vmem>>, vector<1x2x128xf32>
    %1 = vector.shape_cast %0 : vector<1x2x128xf32> to vector<2x128xf32>
    %c1 = arith.constant 1 : index
    %c0_2 = arith.constant 0 : index
    %c0_3 = arith.constant 0 : index
    %2 = vector.load %arg3[%c1, %c0_2, %c0_3] : memref<2x2x128xf32, #tpu.memory_space<vmem>>, vector<1x2x128xf32>
    %3 = vector.shape_cast %2 : vector<1x2x128xf32> to vector<2x128xf32>
    %c0_4 = arith.constant 0 : index
    %c0_5 = arith.constant 0 : index
    %c0_6 = arith.constant 0 : index
    %c0_7 = arith.constant 0 : index
    %4 = vector.load %arg2[%c0_4, %c0_5, %c0_6, %c0_7] : memref<1x14x2x128xf32, #tpu.memory_space<vmem>>, vector<1x1x2x128xf32>
    %5 = vector.shape_cast %4 : vector<1x1x2x128xf32> to vector<2x128xf32>
    %cst = arith.constant 4.47213602 : f32
    %6 = vector.broadcast %cst : f32 to vector<2x128xf32>
    %7 = arith.mulf %5, %6 : vector<2x128xf32>
    %8 = arith.addf %7, %1 : vector<2x128xf32>
    %c0_8 = arith.constant 0 : index
    %c0_9 = arith.constant 0 : index
    %c0_10 = arith.constant 0 : index
    %c0_11 = arith.constant 0 : index
    %9 = vector.load %arg4[%c0_8, %c0_9, %c0_10, %c0_11] : memref<1x14x2x128xf32, #tpu.memory_space<vmem>>, vector<1x1x2x128xf32>
    %10 = vector.shape_cast %9 : vector<1x1x2x128xf32> to vector<2x128xf32>
    %11 = vector.shape_cast %8 : vector<2x128xf32> to vector<1x1x2x128xf32>
    tpu.vector_store %arg4[%c0_8, %c0_9, %c0_10, %c0_11], %11 {strides = array<i32>} : memref<1x14x2x128xf32, #tpu.memory_space<vmem>>, vector<1x1x2x128xf32>,
    %c0_12 = arith.constant 0 : index
    %c1_13 = arith.constant 1 : index
    %c0_14 = arith.constant 0 : index
    %c0_15 = arith.constant 0 : index
    %12 = vector.load %arg2[%c0_12, %c1_13, %c0_14, %c0_15] : memref<1x14x2x128xf32, #tpu.memory_space<vmem>>, vector<1x1x2x128xf32>
    %13 = vector.shape_cast %12 : vector<1x1x2x128xf32> to vector<2x128xf32>
    %cst_16 = arith.constant 4.47213602 : f32
    %14 = vector.broadcast %cst_16 : f32 to vector<2x128xf32>
    %15 = arith.mulf %13, %14 : vector<2x128xf32>
    %16 = arith.addf %15, %3 : vector<2x128xf32>
    %c0_17 = arith.constant 0 : index
    %c1_18 = arith.constant 1 : index
    %c0_19 = arith.constant 0 : index
    %c0_20 = arith.constant 0 : index
    %17 = vector.load %arg4[%c0_17, %c1_18, %c0_19, %c0_20] : memref<1x14x2x128xf32, #tpu.memory_space<vmem>>, vector<1x1x2x128xf32>
    %18 = vector.shape_cast %17 : vector<1x1x2x128xf32> to vector<2x128xf32>
    %19 = vector.shape_cast %16 : vector<2x128xf32> to vector<1x1x2x128xf32>
    tpu.vector_store %arg4[%c0_17, %c1_18, %c0_19, %c0_20], %19 {strides = array<i32>} : memref<1x14x2x128xf32, #tpu.memory_space<vmem>>, vector<1x1x2x128xf32>,
    %c0_21 = arith.constant 0 : index
    %c2 = arith.constant 2 : index
    %c0_22 = arith.constant 0 : index
    %c0_23 = arith.constant 0 : index
    %20 = vector.load %arg2[%c0_21, %c2, %c0_22, %c0_23] : memref<1x14x2x128xf32, #tpu.memory_space<vmem>>, vector<1x1x2x128xf32>
    %21 = vector.shape_cast %20 : vector<1x1x2x128xf32> to vector<2x128xf32>
    %cst_24 = arith.constant 1.500000e+00 : f32
    %22 = vector.broadcast %cst_24 : f32 to vector<2x128xf32>
    %23 = arith.mulf %21, %22 : vector<2x128xf32>
    %cst_25 = arith.constant -4.500000e+00 : f32
    %24 = vector.broadcast %cst_25 : f32 to vector<2x128xf32>
    %25 = arith.addf %23, %24 : vector<2x128xf32>
    %c0_26 = arith.constant 0 : index
    %c2_27 = arith.constant 2 : index
    %c0_28 = arith.constant 0 : index
    %c0_29 = arith.constant 0 : index
    %26 = vector.load %arg4[%c0_26, %c2_27, %c0_28, %c0_29] : memref<1x14x2x128xf32, #tpu.memory_space<vmem>>, vector<1x1x2x128xf32>
    %27 = vector.shape_cast %26 : vector<1x1x2x128xf32> to vector<2x128xf32>
    %28 = vector.shape_cast %25 : vector<2x128xf32> to vector<1x1x2x128xf32>
    tpu.vector_store %arg4[%c0_26, %c2_27, %c0_28, %c0_29], %28 {strides = array<i32>} : memref<1x14x2x128xf32, #tpu.memory_space<vmem>>, vector<1x1x2x128xf32>,
    %c0_30 = arith.constant 0 : index
    %c3 = arith.constant 3 : index
    %c0_31 = arith.constant 0 : index
    %c0_32 = arith.constant 0 : index
    %29 = vector.load %arg2[%c0_30, %c3, %c0_31, %c0_32] : memref<1x14x2x128xf32, #tpu.memory_space<vmem>>, vector<1x1x2x128xf32>
    %30 = vector.shape_cast %29 : vector<1x1x2x128xf32> to vector<2x128xf32>
    %31 = math.exp %30 : vector<2x128xf32>
    %cst_33 = arith.constant 4.000000e+00 : f32
    %32 = vector.broadcast %cst_33 : f32 to vector<2x128xf32>
    %33 = arith.mulf %31, %32 : vector<2x128xf32>
    %c0_34 = arith.constant 0 : index
    %c3_35 = arith.constant 3 : index
    %c0_36 = arith.constant 0 : index
    %c0_37 = arith.constant 0 : index
    %34 = vector.load %arg4[%c0_34, %c3_35, %c0_36, %c0_37] : memref<1x14x2x128xf32, #tpu.memory_space<vmem>>, vector<1x1x2x128xf32>
    %35 = vector.shape_cast %34 : vector<1x1x2x128xf32> to vector<2x128xf32>
    %36 = vector.shape_cast %33 : vector<2x128xf32> to vector<1x1x2x128xf32>
    tpu.vector_store %arg4[%c0_34, %c3_35, %c0_36, %c0_37], %36 {strides = array<i32>} : memref<1x14x2x128xf32, #tpu.memory_space<vmem>>, vector<1x1x2x128xf32>,
    %c0_38 = arith.constant 0 : index
    %c4 = arith.constant 4 : index
    %c0_39 = arith.constant 0 : index
    %c0_40 = arith.constant 0 : index
    %37 = vector.load %arg2[%c0_38, %c4, %c0_39, %c0_40] : memref<1x14x2x128xf32, #tpu.memory_space<vmem>>, vector<1x1x2x128xf32>
    %38 = vector.shape_cast %37 : vector<1x1x2x128xf32> to vector<2x128xf32>
    %39 = math.exp %38 : vector<2x128xf32>
    %cst_41 = arith.constant 2.000000e+00 : f32
    %40 = vector.broadcast %cst_41 : f32 to vector<2x128xf32>
    %41 = arith.mulf %39, %40 : vector<2x128xf32>
    %c0_42 = arith.constant 0 : index
    %c4_43 = arith.constant 4 : index
    %c0_44 = arith.constant 0 : index
    %c0_45 = arith.constant 0 : index
    %42 = vector.load %arg4[%c0_42, %c4_43, %c0_44, %c0_45] : memref<1x14x2x128xf32, #tpu.memory_space<vmem>>, vector<1x1x2x128xf32>
    %43 = vector.shape_cast %42 : vector<1x1x2x128xf32> to vector<2x128xf32>
    %44 = vector.shape_cast %41 : vector<2x128xf32> to vector<1x1x2x128xf32>
    tpu.vector_store %arg4[%c0_42, %c4_43, %c0_44, %c0_45], %44 {strides = array<i32>} : memref<1x14x2x128xf32, #tpu.memory_space<vmem>>, vector<1x1x2x128xf32>,
    %c0_46 = arith.constant 0 : index
    %c5 = arith.constant 5 : index
    %c0_47 = arith.constant 0 : index
    %c0_48 = arith.constant 0 : index
    %45 = vector.load %arg2[%c0_46, %c5, %c0_47, %c0_48] : memref<1x14x2x128xf32, #tpu.memory_space<vmem>>, vector<1x1x2x128xf32>
    %46 = vector.shape_cast %45 : vector<1x1x2x128xf32> to vector<2x128xf32>
    %47 = math.exp %46 : vector<2x128xf32>
    %cst_49 = arith.constant 1.500000e+00 : f32
    %48 = vector.broadcast %cst_49 : f32 to vector<2x128xf32>
    %49 = arith.mulf %47, %48 : vector<2x128xf32>
    %c0_50 = arith.constant 0 : index
    %c5_51 = arith.constant 5 : index
    %c0_52 = arith.constant 0 : index
    %c0_53 = arith.constant 0 : index
    %50 = vector.load %arg4[%c0_50, %c5_51, %c0_52, %c0_53] : memref<1x14x2x128xf32, #tpu.memory_space<vmem>>, vector<1x1x2x128xf32>
    %51 = vector.shape_cast %50 : vector<1x1x2x128xf32> to vector<2x128xf32>
    %52 = vector.shape_cast %49 : vector<2x128xf32> to vector<1x1x2x128xf32>
    tpu.vector_store %arg4[%c0_50, %c5_51, %c0_52, %c0_53], %52 {strides = array<i32>} : memref<1x14x2x128xf32, #tpu.memory_space<vmem>>, vector<1x1x2x128xf32>,
    %c0_54 = arith.constant 0 : index
    %c6 = arith.constant 6 : index
    %c0_55 = arith.constant 0 : index
    %c0_56 = arith.constant 0 : index
    %53 = vector.load %arg2[%c0_54, %c6, %c0_55, %c0_56] : memref<1x14x2x128xf32, #tpu.memory_space<vmem>>, vector<1x1x2x128xf32>
    %54 = vector.shape_cast %53 : vector<1x1x2x128xf32> to vector<2x128xf32>
    %cst_57 = arith.constant 0.000000e+00 : f32
    %55 = vector.broadcast %cst_57 : f32 to vector<2x128xf32>
    %56 = arith.addf %54, %55 : vector<2x128xf32>
    %cst_58 = arith.constant 0.159154937 : f32
    %57 = vector.broadcast %cst_58 : f32 to vector<2x128xf32>
    %58 = arith.mulf %56, %57 : vector<2x128xf32>
    %cst_59 = arith.constant 5.000000e-01 : f32
    %59 = vector.broadcast %cst_59 : f32 to vector<2x128xf32>
    %60 = arith.addf %58, %59 : vector<2x128xf32>
    %61 = math.floor %60 : vector<2x128xf32>
    %cst_60 = arith.constant 6.28318548 : f32
    %62 = vector.broadcast %cst_60 : f32 to vector<2x128xf32>
    %63 = arith.mulf %62, %61 : vector<2x128xf32>
    %64 = arith.subf %56, %63 : vector<2x128xf32>
    %c0_61 = arith.constant 0 : index
    %c6_62 = arith.constant 6 : index
    %c0_63 = arith.constant 0 : index
    %c0_64 = arith.constant 0 : index
    %65 = vector.load %arg4[%c0_61, %c6_62, %c0_63, %c0_64] : memref<1x14x2x128xf32, #tpu.memory_space<vmem>>, vector<1x1x2x128xf32>
    %66 = vector.shape_cast %65 : vector<1x1x2x128xf32> to vector<2x128xf32>
    %67 = vector.shape_cast %64 : vector<2x128xf32> to vector<1x1x2x128xf32>
    tpu.vector_store %arg4[%c0_61, %c6_62, %c0_63, %c0_64], %67 {strides = array<i32>} : memref<1x14x2x128xf32, #tpu.memory_space<vmem>>, vector<1x1x2x128xf32>,
    %c0_65 = arith.constant 0 : index
    %c7 = arith.constant 7 : index
    %c0_66 = arith.constant 0 : index
    %c0_67 = arith.constant 0 : index
    %68 = vector.load %arg2[%c0_65, %c7, %c0_66, %c0_67] : memref<1x14x2x128xf32, #tpu.memory_space<vmem>>, vector<1x1x2x128xf32>
    %69 = vector.shape_cast %68 : vector<1x1x2x128xf32> to vector<2x128xf32>
    %cst_68 = arith.constant 4.47213602 : f32
    %70 = vector.broadcast %cst_68 : f32 to vector<2x128xf32>
    %71 = arith.mulf %69, %70 : vector<2x128xf32>
    %72 = arith.addf %71, %1 : vector<2x128xf32>
    %c0_69 = arith.constant 0 : index
    %c7_70 = arith.constant 7 : index
    %c0_71 = arith.constant 0 : index
    %c0_72 = arith.constant 0 : index
    %73 = vector.load %arg4[%c0_69, %c7_70, %c0_71, %c0_72] : memref<1x14x2x128xf32, #tpu.memory_space<vmem>>, vector<1x1x2x128xf32>
    %74 = vector.shape_cast %73 : vector<1x1x2x128xf32> to vector<2x128xf32>
    %75 = vector.shape_cast %72 : vector<2x128xf32> to vector<1x1x2x128xf32>
    tpu.vector_store %arg4[%c0_69, %c7_70, %c0_71, %c0_72], %75 {strides = array<i32>} : memref<1x14x2x128xf32, #tpu.memory_space<vmem>>, vector<1x1x2x128xf32>,
    %c0_73 = arith.constant 0 : index
    %c8 = arith.constant 8 : index
    %c0_74 = arith.constant 0 : index
    %c0_75 = arith.constant 0 : index
    %76 = vector.load %arg2[%c0_73, %c8, %c0_74, %c0_75] : memref<1x14x2x128xf32, #tpu.memory_space<vmem>>, vector<1x1x2x128xf32>
    %77 = vector.shape_cast %76 : vector<1x1x2x128xf32> to vector<2x128xf32>
    %cst_76 = arith.constant 4.47213602 : f32
    %78 = vector.broadcast %cst_76 : f32 to vector<2x128xf32>
    %79 = arith.mulf %77, %78 : vector<2x128xf32>
    %80 = arith.addf %79, %3 : vector<2x128xf32>
    %c0_77 = arith.constant 0 : index
    %c8_78 = arith.constant 8 : index
    %c0_79 = arith.constant 0 : index
    %c0_80 = arith.constant 0 : index
    %81 = vector.load %arg4[%c0_77, %c8_78, %c0_79, %c0_80] : memref<1x14x2x128xf32, #tpu.memory_space<vmem>>, vector<1x1x2x128xf32>
    %82 = vector.shape_cast %81 : vector<1x1x2x128xf32> to vector<2x128xf32>
    %83 = vector.shape_cast %80 : vector<2x128xf32> to vector<1x1x2x128xf32>
    tpu.vector_store %arg4[%c0_77, %c8_78, %c0_79, %c0_80], %83 {strides = array<i32>} : memref<1x14x2x128xf32, #tpu.memory_space<vmem>>, vector<1x1x2x128xf32>,
    %c0_81 = arith.constant 0 : index
    %c9 = arith.constant 9 : index
    %c0_82 = arith.constant 0 : index
    %c0_83 = arith.constant 0 : index
    %84 = vector.load %arg2[%c0_81, %c9, %c0_82, %c0_83] : memref<1x14x2x128xf32, #tpu.memory_space<vmem>>, vector<1x1x2x128xf32>
    %85 = vector.shape_cast %84 : vector<1x1x2x128xf32> to vector<2x128xf32>
    %cst_84 = arith.constant 1.500000e+00 : f32
    %86 = vector.broadcast %cst_84 : f32 to vector<2x128xf32>
    %87 = arith.mulf %85, %86 : vector<2x128xf32>
    %cst_85 = arith.constant -4.500000e+00 : f32
    %88 = vector.broadcast %cst_85 : f32 to vector<2x128xf32>
    %89 = arith.addf %87, %88 : vector<2x128xf32>
    %c0_86 = arith.constant 0 : index
    %c9_87 = arith.constant 9 : index
    %c0_88 = arith.constant 0 : index
    %c0_89 = arith.constant 0 : index
    %90 = vector.load %arg4[%c0_86, %c9_87, %c0_88, %c0_89] : memref<1x14x2x128xf32, #tpu.memory_space<vmem>>, vector<1x1x2x128xf32>
    %91 = vector.shape_cast %90 : vector<1x1x2x128xf32> to vector<2x128xf32>
    %92 = vector.shape_cast %89 : vector<2x128xf32> to vector<1x1x2x128xf32>
    tpu.vector_store %arg4[%c0_86, %c9_87, %c0_88, %c0_89], %92 {strides = array<i32>} : memref<1x14x2x128xf32, #tpu.memory_space<vmem>>, vector<1x1x2x128xf32>,
    %c0_90 = arith.constant 0 : index
    %c10 = arith.constant 10 : index
    %c0_91 = arith.constant 0 : index
    %c0_92 = arith.constant 0 : index
    %93 = vector.load %arg2[%c0_90, %c10, %c0_91, %c0_92] : memref<1x14x2x128xf32, #tpu.memory_space<vmem>>, vector<1x1x2x128xf32>
    %94 = vector.shape_cast %93 : vector<1x1x2x128xf32> to vector<2x128xf32>
    %95 = math.exp %94 : vector<2x128xf32>
    %cst_93 = arith.constant 4.000000e+00 : f32
    %96 = vector.broadcast %cst_93 : f32 to vector<2x128xf32>
    %97 = arith.mulf %95, %96 : vector<2x128xf32>
    %c0_94 = arith.constant 0 : index
    %c10_95 = arith.constant 10 : index
    %c0_96 = arith.constant 0 : index
    %c0_97 = arith.constant 0 : index
    %98 = vector.load %arg4[%c0_94, %c10_95, %c0_96, %c0_97] : memref<1x14x2x128xf32, #tpu.memory_space<vmem>>, vector<1x1x2x128xf32>
    %99 = vector.shape_cast %98 : vector<1x1x2x128xf32> to vector<2x128xf32>
    %100 = vector.shape_cast %97 : vector<2x128xf32> to vector<1x1x2x128xf32>
    tpu.vector_store %arg4[%c0_94, %c10_95, %c0_96, %c0_97], %100 {strides = array<i32>} : memref<1x14x2x128xf32, #tpu.memory_space<vmem>>, vector<1x1x2x128xf32>,
    %c0_98 = arith.constant 0 : index
    %c11 = arith.constant 11 : index
    %c0_99 = arith.constant 0 : index
    %c0_100 = arith.constant 0 : index
    %101 = vector.load %arg2[%c0_98, %c11, %c0_99, %c0_100] : memref<1x14x2x128xf32, #tpu.memory_space<vmem>>, vector<1x1x2x128xf32>
    %102 = vector.shape_cast %101 : vector<1x1x2x128xf32> to vector<2x128xf32>
    %103 = math.exp %102 : vector<2x128xf32>
    %cst_101 = arith.constant 2.000000e+00 : f32
    %104 = vector.broadcast %cst_101 : f32 to vector<2x128xf32>
    %105 = arith.mulf %103, %104 : vector<2x128xf32>
    %c0_102 = arith.constant 0 : index
    %c11_103 = arith.constant 11 : index
    %c0_104 = arith.constant 0 : index
    %c0_105 = arith.constant 0 : index
    %106 = vector.load %arg4[%c0_102, %c11_103, %c0_104, %c0_105] : memref<1x14x2x128xf32, #tpu.memory_space<vmem>>, vector<1x1x2x128xf32>
    %107 = vector.shape_cast %106 : vector<1x1x2x128xf32> to vector<2x128xf32>
    %108 = vector.shape_cast %105 : vector<2x128xf32> to vector<1x1x2x128xf32>
    tpu.vector_store %arg4[%c0_102, %c11_103, %c0_104, %c0_105], %108 {strides = array<i32>} : memref<1x14x2x128xf32, #tpu.memory_space<vmem>>, vector<1x1x2x128xf32>,
    %c0_106 = arith.constant 0 : index
    %c12 = arith.constant 12 : index
    %c0_107 = arith.constant 0 : index
    %c0_108 = arith.constant 0 : index
    %109 = vector.load %arg2[%c0_106, %c12, %c0_107, %c0_108] : memref<1x14x2x128xf32, #tpu.memory_space<vmem>>, vector<1x1x2x128xf32>
    %110 = vector.shape_cast %109 : vector<1x1x2x128xf32> to vector<2x128xf32>
    %111 = math.exp %110 : vector<2x128xf32>
    %cst_109 = arith.constant 1.500000e+00 : f32
    %112 = vector.broadcast %cst_109 : f32 to vector<2x128xf32>
    %113 = arith.mulf %111, %112 : vector<2x128xf32>
    %c0_110 = arith.constant 0 : index
    %c12_111 = arith.constant 12 : index
    %c0_112 = arith.constant 0 : index
    %c0_113 = arith.constant 0 : index
    %114 = vector.load %arg4[%c0_110, %c12_111, %c0_112, %c0_113] : memref<1x14x2x128xf32, #tpu.memory_space<vmem>>, vector<1x1x2x128xf32>
    %115 = vector.shape_cast %114 : vector<1x1x2x128xf32> to vector<2x128xf32>
    %116 = vector.shape_cast %113 : vector<2x128xf32> to vector<1x1x2x128xf32>
    tpu.vector_store %arg4[%c0_110, %c12_111, %c0_112, %c0_113], %116 {strides = array<i32>} : memref<1x14x2x128xf32, #tpu.memory_space<vmem>>, vector<1x1x2x128xf32>,
    %c0_114 = arith.constant 0 : index
    %c13 = arith.constant 13 : index
    %c0_115 = arith.constant 0 : index
    %c0_116 = arith.constant 0 : index
    %117 = vector.load %arg2[%c0_114, %c13, %c0_115, %c0_116] : memref<1x14x2x128xf32, #tpu.memory_space<vmem>>, vector<1x1x2x128xf32>
    %118 = vector.shape_cast %117 : vector<1x1x2x128xf32> to vector<2x128xf32>
    %cst_117 = arith.constant 1.57079625 : f32
    %119 = vector.broadcast %cst_117 : f32 to vector<2x128xf32>
    %120 = arith.addf %118, %119 : vector<2x128xf32>
    %cst_118 = arith.constant 0.159154937 : f32
    %121 = vector.broadcast %cst_118 : f32 to vector<2x128xf32>
    %122 = arith.mulf %120, %121 : vector<2x128xf32>
    %cst_119 = arith.constant 5.000000e-01 : f32
    %123 = vector.broadcast %cst_119 : f32 to vector<2x128xf32>
    %124 = arith.addf %122, %123 : vector<2x128xf32>
    %125 = math.floor %124 : vector<2x128xf32>
    %cst_120 = arith.constant 6.28318548 : f32
    %126 = vector.broadcast %cst_120 : f32 to vector<2x128xf32>
    %127 = arith.mulf %126, %125 : vector<2x128xf32>
    %128 = arith.subf %120, %127 : vector<2x128xf32>
    %c0_121 = arith.constant 0 : index
    %c13_122 = arith.constant 13 : index
    %c0_123 = arith.constant 0 : index
    %c0_124 = arith.constant 0 : index
    %129 = vector.load %arg4[%c0_121, %c13_122, %c0_123, %c0_124] : memref<1x14x2x128xf32, #tpu.memory_space<vmem>>, vector<1x1x2x128xf32>
    %130 = vector.shape_cast %129 : vector<1x1x2x128xf32> to vector<2x128xf32>
    %131 = vector.shape_cast %128 : vector<2x128xf32> to vector<1x1x2x128xf32>
    tpu.vector_store %arg4[%c0_121, %c13_122, %c0_123, %c0_124], %131 {strides = array<i32>} : memref<1x14x2x128xf32, #tpu.memory_space<vmem>>, vector<1x1x2x128xf32>,
    return
  }
  func.func @transform_0(%arg0: i32, %arg1: i32) -> (i32, i32, i32, i32) {
    %c0_i32 = arith.constant 0 : i32
    %c0_i32_0 = arith.constant 0 : i32
    %c0_i32_1 = arith.constant 0 : i32
    return %arg1, %c0_i32, %arg0, %c0_i32_0 : i32, i32, i32, i32
  }
  func.func @transform_1(%arg0: i32, %arg1: i32) -> (i32, i32, i32) {
    %c0_i32 = arith.constant 0 : i32
    %c0_i32_0 = arith.constant 0 : i32
    %c0_i32_1 = arith.constant 0 : i32
    return %c0_i32, %arg0, %c0_i32_0 : i32, i32, i32
  }
  func.func @transform_2(%arg0: i32, %arg1: i32) -> (i32, i32, i32, i32) {
    %c0_i32 = arith.constant 0 : i32
    %c0_i32_0 = arith.constant 0 : i32
    %c0_i32_1 = arith.constant 0 : i32
    return %arg1, %c0_i32, %arg0, %c0_i32_0 : i32, i32, i32, i32
  }
}

</mosaic_0001>

<bundles_post_ra>
// kernel: offset_to_bbox.1
= control target key start
LH: loop header
LB: loop body
LE: loop exit
PB: predicated region body
PF: predicated region fallthrough
CT: control target
= control target key end

     0   :  { %s503_s9 = smov 0   ;;  %s505_s10 = smov 0   ;;  %s574_s0 = inlined_call_operand.vmem [shape: f32[2,14,2,128], index: 0, kind: input, shape index: {}]   ;;  %s575_s1 = inlined_call_operand.vmem [shape: f32[2,2,128], index: 1, kind: input, shape index: {}]   ;;  %s576_s2 = inlined_call_operand.vmem [shape: f32[2,14,2,128], index: 2, kind: output, shape index: {}]  }
   0x1   :  { %s507_s11 = smov 0  }
   0x2 LB: > { %s21_s12 = sadd.s32 1, %s482_s10  ;;  %p395_p0 = scmp.ge.s32.totalorder %s486_s11, 1  ;;  %s486_s11 = sphi %s507_s11, %s12_s11   ;;  %s482_s10 = sphi %s505_s10, %s578_s10   ;;  %s478_s9 = sphi %s503_s9, %s577_s9  }
   0x3   : > { %p22_p1 = scmp.ge.s32.totalorder %s21_s12, 2  ;;  %p140_p2 = scmp.lt.s32.totalorder %s486_s11, 3 }
   0x5   : > { %s580_s12 = smov (%p22_p1, %s21_s12), 0  ;;  %p141_p3 = pnand %p395_p0, %p140_p2 }
   0x6   : > { %p172_p4 = scmp.lt.s32.totalorder (!%p141_p3), %s478_s9, 1 }
   0x7   : > { %144 = sbr.rel (%p141_p3) target bundleno = 41 (0x29), region = 28 }
   0xc   : > { %s582_s9 = smov (!%p172_p4, %s478_s9), 1  ;;  %v192_v0 = vld [vmem:[%s575_s1] sm:$0x3]  ;;  %v398_v1 = vld [vmem:[%s575_s1 + $0x2] sm:$0x3] }
   0xd   : > { %s427_s13 = smul.u32 28, %s582_s9 }
   0xf   : > { %s524_s16 = scalar_lea.vmem %s574_s0, %s427_s13  ;;  %s538_s23 = scalar_lea.vmem %s576_s2, %s427_s13 }
  0x10   : > { %v195_v2 = vld [vmem:[%s524_s16] sm:$0x3]  ;;  %v399_v3 = vld [vmem:[%s524_s16 + $0x2] sm:$0x3]  ;;  %v401_v4 = vld [vmem:[%s524_s16 + $0x4] sm:$0x3] }
  0x11   : > { %v196_v5 = vmul.f32 4.472136, %v195_v2  ;;  %v201_v6 = vmul.f32 4.472136, %v399_v3  ;;  %v207_v7 = vmul.f32 1.5, %v401_v4 }
  0x12   : > { %v403_v8 = vld [vmem:[%s524_s16 + $0x6] sm:$0x3]  ;;  %v405_v9 = vld [vmem:[%s524_s16 + $0x8] sm:$0x3]  ;;  %v407_v10 = vld [vmem:[%s524_s16 + $0xa] sm:$0x3] }
  0x13   : > { %v197_v11 = vadd.f32 %v196_v5, %v192_v0  ;;  %v202_v12 = vadd.f32 %v398_v1, %v201_v6  ;;  %v208_v13 = vadd.f32 -4.5, %v207_v7  ;;  %v213_v14 = vmul.f32 1.442695, %v403_v8  ;;  %v409_v15 = vld [vmem:[%s524_s16 + $0xc] sm:$0x3] }
  0x14   : > { %v220_v16 = vmul.f32 1.442695, %v405_v9  ;;  %v227_v17 = vmul.f32 1.442695, %v407_v10  ;;  %v235_v18 = vmul.f32 0.15915494, %v409_v15 }
  0x15   : > { %198 = vst [vmem:[%s538_s23] sm:$0x3] %v197_v11  ;;  %452 = vpow2.f32 %v213_v14  ;;  %v411_v19 = vld [vmem:[%s524_s16 + $0xe] sm:$0x3]  ;;  %v413_v20 = vld [vmem:[%s524_s16 + $0x10] sm:$0x3] }
  0x16   : > { %400 = vst [vmem:[%s538_s23 + $0x2] sm:$0x3] %v202_v12  ;;  %454 = vpow2.f32 %v220_v16  ;;  %v236_v21 = vadd.f32 0.5, %v235_v18  ;;  %v244_v22 = vmul.f32 4.472136, %v411_v19 }
  0x17   : > { %402 = vst [vmem:[%s538_s23 + $0x4] sm:$0x3] %v208_v13  ;;  %456 = vpow2.f32 %v227_v17  ;;  %v250_v23 = vmul.f32 4.472136, %v413_v20  ;;  %v415_v24 = vld [vmem:[%s524_s16 + $0x12] sm:$0x3] }
  0x18   : > { %v237_v25 = vfloor.f32 %v236_v21  ;;  %v245_v26 = vadd.f32 %v244_v22, %v192_v0  ;;  %v256_v27 = vmul.f32 1.5, %v415_v24  ;;  %v417_v28 = vld [vmem:[%s524_s16 + $0x14] sm:$0x3]  ;;  %v419_v29 = vld [vmem:[%s524_s16 + $0x16] sm:$0x3] }
  0x19   : > { %v251_v30 = vadd.f32 %v398_v1, %v250_v23  ;;  %v262_v31 = vmul.f32 1.442695, %v417_v28  ;;  %v269_v32 = vmul.f32 1.442695, %v419_v29  ;;  %v421_v33 = vld [vmem:[%s524_s16 + $0x18] sm:$0x3] }
  0x1a   : > { %v238_v34 = vmul.f32 6.2831855, %v237_v25  ;;  %412 = vst [vmem:[%s538_s23 + $0xe] sm:$0x3] %v245_v26  ;;  %v257_v35 = vadd.f32 -4.5, %v256_v27 }
  0x1b   : > { %v453_v36 = vpop.eup %452  ;;  %414 = vst [vmem:[%s538_s23 + $0x10] sm:$0x3] %v251_v30  ;;  %458 = vpow2.f32 %v262_v31  ;;  %v276_v37 = vmul.f32 1.442695, %v421_v33  ;;  %v423_v38 = vld [vmem:[%s524_s16 + $0x1a] sm:$0x3] }
  0x1c   : > { %v455_v39 = vpop.eup %454  ;;  %v215_v40 = vmul.f32 4.0, %v453_v36  ;;  %416 = vst [vmem:[%s538_s23 + $0x12] sm:$0x3] %v257_v35  ;;  %460 = vpow2.f32 %v269_v32  ;;  %v283_v41 = vadd.f32 1.5707963, %v423_v38  ;;  %v239_v44 = vsub.f32 %v409_v15, %v238_v34 }
  0x1d   : > { %v457_v42 = vpop.eup %456  ;;  %v222_v43 = vmul.f32 2.0, %v455_v39  ;;  %462 = vpow2.f32 %v276_v37 }
  0x1e   : > { %404 = vst [vmem:[%s538_s23 + $0x6] sm:$0x3] %v215_v40  ;;  %v229_v45 = vmul.f32 1.5, %v457_v42  ;;  %v284_v46 = vmul.f32 0.15915494, %v283_v41 }
  0x1f   : > { %406 = vst [vmem:[%s538_s23 + $0x8] sm:$0x3] %v222_v43 }
  0x20   : > { %408 = vst [vmem:[%s538_s23 + $0xa] sm:$0x3] %v229_v45  ;;  %v285_v47 = vadd.f32 0.5, %v284_v46 }
  0x21   : > { %v459_v48 = vpop.eup %458  ;;  %410 = vst [vmem:[%s538_s23 + $0xc] sm:$0x3] %v239_v44 }
  0x22   : > { %v461_v49 = vpop.eup %460  ;;  %v264_v50 = vmul.f32 4.0, %v459_v48  ;;  %v286_v51 = vfloor.f32 %v285_v47 }
  0x23   : > { %v463_v52 = vpop.eup %462  ;;  %v271_v53 = vmul.f32 2.0, %v461_v49 }
  0x24   : > { %418 = vst [vmem:[%s538_s23 + $0x14] sm:$0x3] %v264_v50  ;;  %v278_v54 = vmul.f32 1.5, %v463_v52  ;;  %v287_v55 = vmul.f32 6.2831855, %v286_v51 }
  0x25   : > { %420 = vst [vmem:[%s538_s23 + $0x16] sm:$0x3] %v271_v53 }
  0x26   : > { %422 = vst [vmem:[%s538_s23 + $0x18] sm:$0x3] %v278_v54  ;;  %v288_v56 = vsub.f32 %v283_v41, %v287_v55 }
  0x28   : > { %424 = vst [vmem:[%s538_s23 + $0x1a] sm:$0x3] %v288_v56 }
  0x29 PF: > { %s12_s11 = sadd.s32 1, %s486_s11   ;;  %s577_s9 = smov %s482_s10 }
  0x2a   : > { %p9_p5 = scmp.ge.s32.totalorder %s12_s11, 4   ;;  %s578_s10 = smov %s580_s12 }
  0x2c   :  { %11 = sbr.rel (!%p9_p5) target bundleno = 2 (0x2), region = 88 }

</bundles_post_ra>
